<compile_context>
chip_gen: v7x
topology: tpu7x:2x2x1
jax: 0.10.0
libtpu: 0.0.40
codegen_flags: <defaults>
</compile_context>

<pallas_src>
import functools

import jax
import jax.numpy as jnp
from jax import lax
from jax.experimental import pallas as pl
from jax.experimental.pallas import tpu as pltpu

HIDDEN = 512
BN_EPS = 1e-5


def _round_up(x, m):
    return (x + m - 1) // m * m


def _invariant_spec(block_shape):
    """Grid-invariant operand: fetched once, request a single VMEM buffer."""
    index_map = lambda k, _n=len(block_shape): (0,) * _n
    try:
        return pl.BlockSpec(block_shape, index_map, pipeline_mode=pl.Buffered(1))
    except Exception:  # older jax without pipeline_mode: fall back to default
        return pl.BlockSpec(block_shape, index_map)


def _output_layer_kernel(x_ref, w1_ref, gamma_ref, beta_ref, w2_ref, b2_ref,
                         o_ref, acc_ref, *, inv_batch, k_dim, ragged):
    """Grid: (num_k_tiles,) reduction over the input-feature dimension."""
    k = pl.program_id(0)

    @pl.when(k == 0)
    def _init():
        acc_ref[...] = jnp.zeros_like(acc_ref)

    # ---- Linear(input_size, 512): accumulate x_tile @ W1_tile on the MXU ----
    # Raw f32 operands streamed from HBM, cast to bf16 here (f32 accumulation).
    # (b1 is omitted: training-mode BN cancels it.)
    x_t = x_ref[...]
    w1_t = w1_ref[...]
    if ragged:
        # Ragged last K tile: the out-of-bounds tail of the streamed block is
        # unspecified -> zero it on both operands before the dot.
        tk = x_ref.shape[1]
        off = k * tk
        col = lax.broadcasted_iota(jnp.int32, x_t.shape, 1) + off
        x_t = jnp.where(col < k_dim, x_t, 0.0)
        row = lax.broadcasted_iota(jnp.int32, w1_t.shape, 0) + off
        w1_t = jnp.where(row < k_dim, w1_t, 0.0)

    acc_ref[...] += jnp.dot(x_t.astype(jnp.bfloat16),
                            w1_t.astype(jnp.bfloat16),
                            preferred_element_type=jnp.float32)

    @pl.when(k == pl.num_programs(0) - 1)
    def _finalize():
        h = acc_ref[...]                                   # (B, 512) f32

        # ---- BatchNorm1d(512): training-mode batch stats, single pass ----
        col_sum = jnp.sum(h, axis=0, keepdims=True)        # (1, 512)
        col_sumsq = jnp.sum(h * h, axis=0, keepdims=True)  # (1, 512)
        mean = col_sum * inv_batch
        var = col_sumsq * inv_batch - mean * mean          # biased variance
        var = jnp.maximum(var, 0.0)                        # f32 cancellation guard
        scale = gamma_ref[...] * lax.rsqrt(var + BN_EPS)   # EUP rsqrt
        shift = beta_ref[...] - mean * scale

        # ---- fused BN-affine + ReLU (one FMA pass + max), f32 elementwise ----
        h_relu = jnp.maximum(h * scale + shift, 0.0)

        # ---- Linear(512, output_size_padded): lane-dense N_pad ----
        out = jnp.dot(h_relu.astype(w2_ref.dtype), w2_ref[...],
                      preferred_element_type=jnp.float32) + b2_ref[...]
        o_ref[...] = out.astype(o_ref.dtype)


@functools.partial(jax.jit, static_argnames=("tk",))
def output_layer(x, w1, b1, gamma, beta, w2, b2, *, tk=2048):
    """x: (B, input_size) f32. Returns (B, output_size) f32.

    Weights are stored pre-transposed: w1 (input_size, 512), w2 (512, output_size).
    b1/gamma/beta/b2 are (1, F) rows.
    """
    del b1  # exactly cancelled by the training-mode BN mean subtraction

    B, K = x.shape
    H = w1.shape[1]
    N = w2.shape[1]
    N_pad = _round_up(N, 128)

    # K tiling: single full-dim block when it fits, else 128-aligned tiles.
    tk = int(tk)
    if tk >= K:
        tk = K
    else:
        tk = _round_up(tk, 128)
        if tk >= K:
            tk = K
    num_k = (K + tk - 1) // tk
    ragged = (K % tk) != 0            # only possible when num_k > 1

    # Lane-dense output: pad w2/b2 to a 128-lane multiple (tiny one-time cost
    # on weights only; padded columns are sliced off outside).
    w2_p = jnp.zeros((H, N_pad), jnp.bfloat16).at[:, :N].set(w2.astype(jnp.bfloat16))
    b2_p = jnp.zeros((1, N_pad), jnp.float32).at[:, :N].set(b2)

    # Scoped-VMEM limit derived from the chip, capped at 75% of physical VMEM.
    try:
        vmem_cap = int(pltpu.get_tpu_info().vmem_capacity_bytes)
    except Exception:
        vmem_cap = 128 << 20
    f32, bf16 = 4, 2
    n_buf = 2 if num_k > 1 else 1
    want = n_buf * B * tk * f32                 # streamed x tiles (f32)
    want += n_buf * tk * H * f32                # streamed w1 tiles (f32)
    want += 2 * H * f32                         # gamma, beta (single-buffered)
    want += H * N_pad * bf16 + N_pad * f32      # w2, b2 (single-buffered)
    want += 2 * B * N_pad * f32                 # output block
    want += B * H * f32                         # f32 accumulator scratch
    want += B * (tk + H) * bf16                 # in-kernel bf16 operand temps
    vmem_limit = int(min(max(2 * want + (4 << 20), 32 << 20), (vmem_cap * 3) // 4))

    kernel = functools.partial(_output_layer_kernel,
                               inv_batch=1.0 / B, k_dim=K, ragged=ragged)

    out = pl.pallas_call(
        kernel,
        out_shape=jax.ShapeDtypeStruct((B, N_pad), jnp.float32),
        grid_spec=pltpu.PrefetchScalarGridSpec(
            num_scalar_prefetch=0,
            grid=(num_k,),
            in_specs=[
                pl.BlockSpec((B, tk), lambda k: (0, k)),    # x tile (raw f32)
                pl.BlockSpec((tk, H), lambda k: (k, 0)),    # w1 tile (raw f32)
                _invariant_spec((1, H)),                    # gamma
                _invariant_spec((1, H)),                    # beta
                _invariant_spec((H, N_pad)),                # w2 (padded, bf16)
                _invariant_spec((1, N_pad)),                # b2 (padded)
            ],
            out_specs=pl.BlockSpec((B, N_pad), lambda k: (0, 0)),
            scratch_shapes=[pltpu.VMEM((B, H), jnp.float32)],
        ),
        compiler_params=pltpu.CompilerParams(
            dimension_semantics=("arbitrary",),   # K is a reduction axis
            vmem_limit_bytes=vmem_limit,
        ),
    )(x, w1, gamma, beta, w2_p, b2_p)

    return out[:, :N]


def init_params(key, input_size, output_size):
    """Deterministic PyTorch-style init: U(-1/sqrt(fan_in), 1/sqrt(fan_in))."""
    k1, k2, k3, k4 = jax.random.split(key, 4)
    bound1 = 1.0 / jnp.sqrt(input_size)
    bound2 = 1.0 / jnp.sqrt(HIDDEN)
    # weights stored pre-transposed: (in_features, out_features)
    w1 = jax.random.uniform(k1, (input_size, HIDDEN), jnp.float32, -bound1, bound1)
    b1 = jax.random.uniform(k2, (1, HIDDEN), jnp.float32, -bound1, bound1)
    w2 = jax.random.uniform(k3, (HIDDEN, output_size), jnp.float32, -bound2, bound2)
    b2 = jax.random.uniform(k4, (1, output_size), jnp.float32, -bound2, bound2)
    gamma = jnp.ones((1, HIDDEN), jnp.float32)   # BN weight init = 1
    beta = jnp.zeros((1, HIDDEN), jnp.float32)   # BN bias init = 0
    return w1, b1, gamma, beta, w2, b2


def reference(x, w1, b1, gamma, beta, w2, b2):
    """Pure-f32 reference with exact PyTorch training-mode BN semantics."""
    h = x @ w1 + b1
    mean = h.mean(axis=0, keepdims=True)
    var = ((h - mean) ** 2).mean(axis=0, keepdims=True)   # biased variance
    h = (h - mean) / jnp.sqrt(var + BN_EPS) * gamma + beta
    h = jnp.maximum(h, 0.0)
    return h @ w2 + b2


if __name__ == "__main__":
    input_size = 300    # non-multiple of 128 -> exercises unaligned full-dim K block
    output_size = 16    # < 128 -> exercises the lane-dense output padding
    batch = 6           # non-multiple of 8 -> exercises unpadded batch handling

    key = jax.random.PRNGKey(0)
    kx, kp, kg, kb = jax.random.split(key, 4)
    x = jax.random.normal(kx, (batch, input_size), jnp.float32)
    w1, b1, gamma, beta, w2, b2 = init_params(kp, input_size, output_size)
    # PyTorch init is gamma=1/beta=0; perturb so the check exercises the affine path.
    gamma = gamma + 0.1 * jax.random.normal(kg, gamma.shape, jnp.float32)
    beta = beta + 0.1 * jax.random.normal(kb, beta.shape, jnp.float32)

    ref = reference(x, w1, b1, gamma, beta, w2, b2)

    # Path 1: default tk -> single grid step, no K tiling, no padding of x/w1.
    out = output_layer(x, w1, b1, gamma, beta, w2, b2)
    out = jax.block_until_ready(out)
    assert out.shape == (batch, output_size)
    # bf16 MXU operands (f32 accumulation) -> ~1e-2-level difference vs. pure f32.
    assert jnp.allclose(out, ref, atol=3e-2, rtol=3e-2), float(
        jnp.max(jnp.abs(out - ref)))

    # Path 2: force K tiling (3 steps, ragged last tile) to exercise the
    # multi-step accumulator + in-kernel OOB masking path.
    out2 = output_layer(x, w1, b1, gamma, beta, w2, b2, tk=128)
    out2 = jax.block_until_ready(out2)
    assert jnp.allclose(out2, ref, atol=3e-2, rtol=3e-2), float(
        jnp.max(jnp.abs(out2 - ref)))

    print("KERNEL_OK")
</pallas_src>

<mosaic_0001>
module attributes {stable_mosaic.version = 11 : i64} {
  func.func @_output_layer_kernel(%arg0: i32, %arg1: memref<6x300xf32, #tpu.memory_space<vmem>>, %arg2: memref<300x512xf32, #tpu.memory_space<vmem>>, %arg3: memref<1x512xf32, #tpu.memory_space<vmem>>, %arg4: memref<1x512xf32, #tpu.memory_space<vmem>>, %arg5: memref<512x128xbf16, #tpu.memory_space<vmem>>, %arg6: memref<1x128xf32, #tpu.memory_space<vmem>>, %arg7: memref<6x128xf32, #tpu.memory_space<vmem>>, %arg8: memref<6x512xf32, #tpu.memory_space<vmem>>) attributes {dimension_semantics = [#tpu.dimension_semantics<arbitrary>], iteration_bounds = array<i64: 1>, scalar_prefetch = 0 : i64, scratch_operands = 1 : i64, tpu.core_type = #tpu.core_type<tc>, window_params = [{transform_indices = @transform_0, window_bounds = array<i64: 6, 300>}, {transform_indices = @transform_1, window_bounds = array<i64: 300, 512>}, {pipeline_mode = #tpu.pipeline_mode<synchronous>, transform_indices = @transform_2, window_bounds = array<i64: 1, 512>}, {pipeline_mode = #tpu.pipeline_mode<synchronous>, transform_indices = @transform_3, window_bounds = array<i64: 1, 512>}, {pipeline_mode = #tpu.pipeline_mode<synchronous>, transform_indices = @transform_4, window_bounds = array<i64: 512, 128>}, {pipeline_mode = #tpu.pipeline_mode<synchronous>, transform_indices = @transform_5, window_bounds = array<i64: 1, 128>}, {pipeline_mode = #tpu.pipeline_mode<synchronous>, transform_indices = @transform_6, window_bounds = array<i64: 6, 128>}]} {
    %c0_i32 = arith.constant 0 : i32
    %0 = arith.cmpi eq, %arg0, %c0_i32 : i32
    %1 = arith.extui %0 : i1 to i32
    %c0_i32_0 = arith.constant 0 : i32
    %2 = arith.cmpi ne, %1, %c0_i32_0 : i32
    scf.if %2 {
      %cst_10 = arith.constant 0.000000e+00 : f32
      %14 = vector.broadcast %cst_10 : f32 to vector<6x512xf32>
      %c0_11 = arith.constant 0 : index
      %c0_12 = arith.constant 0 : index
      %15 = vector.load %arg8[%c0_11, %c0_12] : memref<6x512xf32, #tpu.memory_space<vmem>>, vector<6x512xf32>
      tpu.vector_store %arg8[%c0_11, %c0_12], %14 {strides = array<i32>} : memref<6x512xf32, #tpu.memory_space<vmem>>, vector<6x512xf32>,
    } else {
    }
    %c0 = arith.constant 0 : index
    %c0_1 = arith.constant 0 : index
    %3 = vector.load %arg1[%c0, %c0_1] : memref<6x300xf32, #tpu.memory_space<vmem>>, vector<6x300xf32>
    %c0_2 = arith.constant 0 : index
    %c0_3 = arith.constant 0 : index
    %4 = vector.load %arg2[%c0_2, %c0_3] : memref<300x512xf32, #tpu.memory_space<vmem>>, vector<300x512xf32>
    %c0_4 = arith.constant 0 : index
    %c0_5 = arith.constant 0 : index
    %5 = vector.load %arg8[%c0_4, %c0_5] : memref<6x512xf32, #tpu.memory_space<vmem>>, vector<6x512xf32>
    %6 = arith.truncf %3 : vector<6x300xf32> to vector<6x300xbf16>
    %7 = arith.truncf %4 : vector<300x512xf32> to vector<300x512xbf16>
    %cst = arith.constant dense<0.000000e+00> : vector<6x512xf32>
    %8 = tpu.matmul %6, %7, %cst {dimension_numbers = #tpu.dot_dimension_numbers<[1], [0], [0], [1], [0, 0, 1, 1], [], []>} : vector<6x300xbf16>, vector<300x512xbf16>, vector<6x512xf32> -> vector<6x512xf32>
    %9 = arith.addf %5, %8 : vector<6x512xf32>
    %c0_6 = arith.constant 0 : index
    %c0_7 = arith.constant 0 : index
    %10 = vector.load %arg8[%c0_6, %c0_7] : memref<6x512xf32, #tpu.memory_space<vmem>>, vector<6x512xf32>
    tpu.vector_store %arg8[%c0_6, %c0_7], %9 {strides = array<i32>} : memref<6x512xf32, #tpu.memory_space<vmem>>, vector<6x512xf32>,
    %c0_i32_8 = arith.constant 0 : i32
    %11 = arith.cmpi eq, %arg0, %c0_i32_8 : i32
    %12 = arith.extui %11 : i1 to i32
    %c0_i32_9 = arith.constant 0 : i32
    %13 = arith.cmpi ne, %12, %c0_i32_9 : i32
    scf.if %13 {
      %c0_10 = arith.constant 0 : index
      %c0_11 = arith.constant 0 : index
      %14 = vector.load %arg8[%c0_10, %c0_11] : memref<6x512xf32, #tpu.memory_space<vmem>>, vector<6x512xf32>
      %cst_12 = arith.constant dense<0.000000e+00> : vector<512xf32>
      %15 = vector.multi_reduction <add>, %14, %cst_12 [0] : vector<6x512xf32> to vector<512xf32>
      %16 = vector.shape_cast %15 : vector<512xf32> to vector<1x512xf32>
      %17 = arith.mulf %14, %14 : vector<6x512xf32>
      %cst_13 = arith.constant dense<0.000000e+00> : vector<512xf32>
      %18 = vector.multi_reduction <add>, %17, %cst_13 [0] : vector<6x512xf32> to vector<512xf32>
      %19 = vector.shape_cast %18 : vector<512xf32> to vector<1x512xf32>
      %cst_14 = arith.constant 0.166666672 : f32
      %20 = vector.broadcast %cst_14 : f32 to vector<1x512xf32>
      %21 = arith.mulf %16, %20 : vector<1x512xf32>
      %cst_15 = arith.constant 0.166666672 : f32
      %22 = vector.broadcast %cst_15 : f32 to vector<1x512xf32>
      %23 = arith.mulf %19, %22 : vector<1x512xf32>
      %24 = arith.mulf %21, %21 : vector<1x512xf32>
      %25 = arith.subf %23, %24 : vector<1x512xf32>
      %cst_16 = arith.constant 0.000000e+00 : f32
      %26 = vector.broadcast %cst_16 : f32 to vector<1x512xf32>
      %27 = arith.maximumf %25, %26 : vector<1x512xf32>
      %c0_17 = arith.constant 0 : index
      %c0_18 = arith.constant 0 : index
      %28 = vector.load %arg3[%c0_17, %c0_18] : memref<1x512xf32, #tpu.memory_space<vmem>>, vector<1x512xf32>
      %cst_19 = arith.constant 9.99999974E-6 : f32
      %29 = vector.broadcast %cst_19 : f32 to vector<1x512xf32>
      %30 = arith.addf %27, %29 : vector<1x512xf32>
      %31 = math.rsqrt %30 : vector<1x512xf32>
      %32 = arith.mulf %28, %31 : vector<1x512xf32>
      %c0_20 = arith.constant 0 : index
      %c0_21 = arith.constant 0 : index
      %33 = vector.load %arg4[%c0_20, %c0_21] : memref<1x512xf32, #tpu.memory_space<vmem>>, vector<1x512xf32>
      %34 = arith.mulf %21, %32 : vector<1x512xf32>
      %35 = arith.subf %33, %34 : vector<1x512xf32>
      %36 = vector.broadcast %32 : vector<1x512xf32> to vector<6x512xf32>
      %37 = arith.mulf %14, %36 : vector<6x512xf32>
      %38 = vector.broadcast %35 : vector<1x512xf32> to vector<6x512xf32>
      %39 = arith.addf %37, %38 : vector<6x512xf32>
      %cst_22 = arith.constant 0.000000e+00 : f32
      %40 = vector.broadcast %cst_22 : f32 to vector<6x512xf32>
      %41 = arith.maximumf %39, %40 : vector<6x512xf32>
      %42 = arith.truncf %41 : vector<6x512xf32> to vector<6x512xbf16>
      %c0_23 = arith.constant 0 : index
      %c0_24 = arith.constant 0 : index
      %43 = vector.load %arg5[%c0_23, %c0_24] : memref<512x128xbf16, #tpu.memory_space<vmem>>, vector<512x128xbf16>
      %cst_25 = arith.constant dense<0.000000e+00> : vector<6x128xf32>
      %44 = tpu.matmul %42, %43, %cst_25 {dimension_numbers = #tpu.dot_dimension_numbers<[1], [0], [0], [1], [0, 0, 1, 1], [], []>} : vector<6x512xbf16>, vector<512x128xbf16>, vector<6x128xf32> -> vector<6x128xf32>
      %c0_26 = arith.constant 0 : index
      %c0_27 = arith.constant 0 : index
      %45 = vector.load %arg6[%c0_26, %c0_27] : memref<1x128xf32, #tpu.memory_space<vmem>>, vector<1x128xf32>
      %46 = vector.broadcast %45 : vector<1x128xf32> to vector<6x128xf32>
      %47 = arith.addf %44, %46 : vector<6x128xf32>
      %c0_28 = arith.constant 0 : index
      %c0_29 = arith.constant 0 : index
      %48 = vector.load %arg7[%c0_28, %c0_29] : memref<6x128xf32, #tpu.memory_space<vmem>>, vector<6x128xf32>
      tpu.vector_store %arg7[%c0_28, %c0_29], %47 {strides = array<i32>} : memref<6x128xf32, #tpu.memory_space<vmem>>, vector<6x128xf32>,
    } else {
    }
    return
  }
  func.func @transform_0(%arg0: i32) -> (i32, i32) {
    %c0_i32 = arith.constant 0 : i32
    %c0_i32_0 = arith.constant 0 : i32
    return %c0_i32, %arg0 : i32, i32
  }
  func.func @transform_1(%arg0: i32) -> (i32, i32) {
    %c0_i32 = arith.constant 0 : i32
    %c0_i32_0 = arith.constant 0 : i32
    return %arg0, %c0_i32 : i32, i32
  }
  func.func @transform_2(%arg0: i32) -> (i32, i32) {
    %c0_i32 = arith.constant 0 : i32
    %c0_i32_0 = arith.constant 0 : i32
    %c0_i32_1 = arith.constant 0 : i32
    return %c0_i32, %c0_i32_0 : i32, i32
  }
  func.func @transform_3(%arg0: i32) -> (i32, i32) {
    %c0_i32 = arith.constant 0 : i32
    %c0_i32_0 = arith.constant 0 : i32
    %c0_i32_1 = arith.constant 0 : i32
    return %c0_i32, %c0_i32_0 : i32, i32
  }
  func.func @transform_4(%arg0: i32) -> (i32, i32) {
    %c0_i32 = arith.constant 0 : i32
    %c0_i32_0 = arith.constant 0 : i32
    %c0_i32_1 = arith.constant 0 : i32
    return %c0_i32, %c0_i32_0 : i32, i32
  }
  func.func @transform_5(%arg0: i32) -> (i32, i32) {
    %c0_i32 = arith.constant 0 : i32
    %c0_i32_0 = arith.constant 0 : i32
    %c0_i32_1 = arith.constant 0 : i32
    return %c0_i32, %c0_i32_0 : i32, i32
  }
  func.func @transform_6(%arg0: i32) -> (i32, i32) {
    %c0_i32 = arith.constant 0 : i32
    %c0_i32_0 = arith.constant 0 : i32
    %c0_i32_1 = arith.constant 0 : i32
    return %c0_i32, %c0_i32_0 : i32, i32
  }
}

</mosaic_0001>

<bundles_post_ra>
// kernel: output_layer.1
= control target key start
LH: loop header
LB: loop body
LE: loop exit
PB: predicated region body
PF: predicated region fallthrough
CT: control target
= control target key end

     0   :  { %v1186_v7 = vmov 0   ;;  %vm275_vm0 = vcmask 1045504   ;;  %vm271_vm1 = vcmask 359424   ;;  %s1861_s0 = inlined_call_operand.vmem [shape: f32[6,300], index: 0, kind: input, shape index: {}]   ;;  %s1862_s1 = inlined_call_operand.vmem [shape: f32[300,512], index: 1, kind: input, shape index: {}]   ;;  %s1863_s2 = inlined_call_operand.vmem [shape: f32[1,512], index: 2, kind: input, shape index: {}]   ;;  %s1864_s3 = inlined_call_operand.vmem [shape: f32[1,512], index: 3, kind: input, shape index: {}]   ;;  %s1865_s4 = inlined_call_operand.vmem [shape: bf16[512,128], index: 4, kind: input, shape index: {}]   ;;  %s1866_s5 = inlined_call_operand.vmem [shape: f32[1,128], index: 5, kind: input, shape index: {}]   ;;  %s1867_s6 = inlined_call_operand.hbm [shape: f32[6,128], index: 6, kind: output, shape index: {}]  }
   0x1   :  { %v37_v0 = vld [vmem:[%s1862_s1 + $0x8] sm:$0xff]  ;;  %v36_v5 = vld [vmem:[%s1862_s1] sm:$0xff]  ;;  %361 = vmatprep.mubr.bf16.mxu1 %v1186_v7  ;;  %v35_v39 = vld [vmem:[%s1861_s0 + $0x10] sm:$0x3f] }
   0x2   :  { %v41_v1 = vld [vmem:[%s1862_s1 + $0x28] sm:$0xff]  ;;  %v40_v6 = vld [vmem:[%s1862_s1 + $0x20] sm:$0xff]  ;;  %v39_v41 = vld [vmem:[%s1862_s1 + $0x18] sm:$0xff]  ;;  %v1336_v52 = vpack.c.bf16 %v35_v39, %v35_v39 }
   0x3   :  { %v165_v2 = vld [vmem:[%s1862_s1 + $0x408] sm:$0xff]  ;;  %v196_v3 = vpack.c.bf16 %v41_v1, %v37_v0  ;;  %v195_v9 = vpack.c.bf16 %v40_v6, %v36_v5  ;;  %v164_v10 = vld [vmem:[%s1862_s1 + $0x400] sm:$0xff]  ;;  %v43_v42 = vld [vmem:[%s1862_s1 + $0x38] sm:$0xff] }
   0x4   :  { %v169_v4 = vld [vmem:[%s1862_s1 + $0x428] sm:$0xff]  ;;  %v168_v11 = vld [vmem:[%s1862_s1 + $0x420] sm:$0xff]  ;;  %v198_v45 = vpack.c.bf16 %v43_v42, %v39_v41  ;;  %v38_v47 = vld [vmem:[%s1862_s1 + $0x10] sm:$0xff] }
   0x5   :  { %v260_v8 = vpack.c.bf16 %v169_v4, %v165_v2  ;;  %v45_v12 = vld [vmem:[%s1862_s1 + $0x48] sm:$0xff]  ;;  %288 = vmatprep.subr.bf16.mxu0 %v196_v3  ;;  %v259_v13 = vpack.c.bf16 %v168_v11, %v164_v10  ;;  %v44_v19 = vld [vmem:[%s1862_s1 + $0x40] sm:$0xff]  ;;  %v42_v48 = vld [vmem:[%s1862_s1 + $0x30] sm:$0xff] }
   0x6   :  { %v49_v14 = vld [vmem:[%s1862_s1 + $0x68] sm:$0xff]  ;;  %289 = vmatpush1.bf16.msra.mxu0 %v195_v9  ;;  %v48_v20 = vld [vmem:[%s1862_s1 + $0x60] sm:$0xff]  ;;  %v47_v51 = vld [vmem:[%s1862_s1 + $0x58] sm:$0xff]  ;;  %v197_v55 = vpack.c.bf16 %v42_v48, %v38_v47 }
   0x7   :  { %v173_v15 = vld [vmem:[%s1862_s1 + $0x448] sm:$0xff]  ;;  %329 = vmatprep.subr.bf16.mxu1 %v260_v8  ;;  %v200_v17 = vpack.c.bf16 %v49_v14, %v45_v12  ;;  %v172_v21 = vld [vmem:[%s1862_s1 + $0x440] sm:$0xff]  ;;  %v199_v22 = vpack.c.bf16 %v48_v20, %v44_v19  ;;  %v51_v54 = vld [vmem:[%s1862_s1 + $0x78] sm:$0xff] }
   0x8   :  { %v177_v16 = vld [vmem:[%s1862_s1 + $0x468] sm:$0xff]  ;;  %330 = vmatpush1.bf16.msra.mxu1 %v259_v13  ;;  %v176_v23 = vld [vmem:[%s1862_s1 + $0x460] sm:$0xff]  ;;  %v46_v59 = vld [vmem:[%s1862_s1 + $0x50] sm:$0xff]  ;;  %v202_v60 = vpack.c.bf16 %v51_v54, %v47_v51 }
   0x9   :  { %v264_v18 = vpack.c.bf16 %v177_v16, %v173_v15  ;;  %v53_v24 = vld [vmem:[%s1862_s1 + $0x88] sm:$0xff]  ;;  %290 = vmatprep.subr.bf16.mxu0 %v200_v17  ;;  %v263_v26 = vpack.c.bf16 %v176_v23, %v172_v21  ;;  %v52_v30 = vld [vmem:[%s1862_s1 + $0x80] sm:$0xff]  ;;  %v50_v61 = vld [vmem:[%s1862_s1 + $0x70] sm:$0xff] }
   0xa   :  { %v57_v25 = vld [vmem:[%s1862_s1 + $0xa8] sm:$0xff]  ;;  %v56_v32 = vld [vmem:[%s1862_s1 + $0xa0] sm:$0xff]  ;;  %291 = vmatpush1.bf16.msra.mxu0 %v199_v22  ;;  %v55_v0 = vld [vmem:[%s1862_s1 + $0x98] sm:$0xff]  ;;  %v201_v3 = vpack.c.bf16 %v50_v61, %v46_v59 }
   0xb   :  { %331 = vmatprep.subr.bf16.mxu1 %v264_v18  ;;  %v204_v27 = vpack.c.bf16 %v57_v25, %v53_v24  ;;  %v181_v28 = vld [vmem:[%s1862_s1 + $0x488] sm:$0xff]  ;;  %v180_v33 = vld [vmem:[%s1862_s1 + $0x480] sm:$0xff]  ;;  %v203_v35 = vpack.c.bf16 %v56_v32, %v52_v30  ;;  %v59_v1 = vld [vmem:[%s1862_s1 + $0xb8] sm:$0xff] }
   0xc   :  { %v185_v29 = vld [vmem:[%s1862_s1 + $0x4a8] sm:$0xf]  ;;  %v184_v34 = vld [vmem:[%s1862_s1 + $0x4a0] sm:$0xf]  ;;  %332 = vmatpush1.bf16.msra.mxu1 %v263_v26  ;;  %v54_v8 = vld [vmem:[%s1862_s1 + $0x90] sm:$0xff]  ;;  %v206_v9 = vpack.c.bf16 %v59_v1, %v55_v0 }
   0xd   :  { %v268_v31 = vpack.c.bf16 %v185_v29, %v181_v28  ;;  %v267_v36 = vpack.c.bf16 %v184_v34, %v180_v33  ;;  %v61_v37 = vld [vmem:[%s1862_s1 + $0xc8] sm:$0xff]  ;;  %292 = vmatprep.subr.bf16.mxu0 %v204_v27  ;;  %v60_v43 = vld [vmem:[%s1862_s1 + $0xc0] sm:$0xff]  ;;  %v58_v10 = vld [vmem:[%s1862_s1 + $0xb0] sm:$0xff] }
   0xe   :  { %v65_v38 = vld [vmem:[%s1862_s1 + $0xe8] sm:$0xff]  ;;  %v64_v46 = vld [vmem:[%s1862_s1 + $0xe0] sm:$0xff]  ;;  %293 = vmatpush1.bf16.msra.mxu0 %v203_v35  ;;  %v63_v13 = vld [vmem:[%s1862_s1 + $0xd8] sm:$0xff]  ;;  %v205_v16 = vpack.c.bf16 %v58_v10, %v54_v8 }
   0xf   :  { %v208_v40 = vpack.c.bf16 %v65_v38, %v61_v37  ;;  %1037 = vmatprep.subr.msk.bf16.mxu1 %vm275_vm0, %v268_v31  ;;  %v277_v44 = vsel %vm275_vm0, %v267_v36, 0  ;;  %v69_v49 = vld [vmem:[%s1862_s1 + $0x108] sm:$0xff]  ;;  %v207_v53 = vpack.c.bf16 %v64_v46, %v60_v43  ;;  %v68_v57 = vld [vmem:[%s1862_s1 + $0x100] sm:$0xff]  ;;  %v67_v14 = vld [vmem:[%s1862_s1 + $0xf8] sm:$0xff] }
  0x10   :  { %v73_v50 = vld [vmem:[%s1862_s1 + $0x128] sm:$0xff]  ;;  %334 = vmatpush1.bf16.msra.mxu1 %v277_v44  ;;  %v72_v58 = vld [vmem:[%s1862_s1 + $0x120] sm:$0xff]  ;;  %v62_v20 = vld [vmem:[%s1862_s1 + $0xd0] sm:$0xff]  ;;  %v210_v21 = vpack.c.bf16 %v67_v14, %v63_v13 }
  0x11   :  { %294 = vmatprep.subr.bf16.mxu0 %v208_v40  ;;  %v212_v56 = vpack.c.bf16 %v73_v50, %v69_v49  ;;  %370 = vmatprep.subr.bf16.mxu1 %v198_v45  ;;  %v77_v62 = vld [vmem:[%s1862_s1 + $0x148] sm:$0xff]  ;;  %v211_v2 = vpack.c.bf16 %v72_v58, %v68_v57  ;;  %v76_v5 = vld [vmem:[%s1862_s1 + $0x140] sm:$0xff]  ;;  %v66_v22 = vld [vmem:[%s1862_s1 + $0xf0] sm:$0xff] }
  0x12   :  { %v81_v63 = vld [vmem:[%s1862_s1 + $0x168] sm:$0xff]  ;;  %295 = vmatpush1.bf16.msra.mxu0 %v207_v53  ;;  %v80_v6 = vld [vmem:[%s1862_s1 + $0x160] sm:$0xff]  ;;  %v71_v25 = vld [vmem:[%s1862_s1 + $0x118] sm:$0xff]  ;;  %v209_v28 = vpack.c.bf16 %v66_v22, %v62_v20 }
  0x13   :  { %1038 = vmatmul.mubr.msk.bf16.vlgmr.msra.gmra.mrb[0].mxu1 %vm271_vm1, %v1336_v52  ;;  %296 = vmatprep.subr.bf16.mxu0 %v212_v56  ;;  %v216_v4 = vpack.c.bf16 %v81_v63, %v77_v62  ;;  %v85_v11 = vld [vmem:[%s1862_s1 + $0x188] sm:$0xff]  ;;  %v215_v15 = vpack.c.bf16 %v80_v6, %v76_v5  ;;  %v84_v18 = vld [vmem:[%s1862_s1 + $0x180] sm:$0xff]  ;;  %v75_v26 = vld [vmem:[%s1862_s1 + $0x138] sm:$0xff] }
  0x14   :  { %371 = vmatpush1.bf16.msra.mxu1 %v197_v55  ;;  %v89_v12 = vld [vmem:[%s1862_s1 + $0x1a8] sm:$0xff]  ;;  %v88_v19 = vld [vmem:[%s1862_s1 + $0x1a0] sm:$0xff]  ;;  %v70_v32 = vld [vmem:[%s1862_s1 + $0x110] sm:$0xff]  ;;  %v214_v33 = vpack.c.bf16 %v75_v26, %v71_v25 }
  0x15   :  { %372 = vmatprep.subr.bf16.mxu1 %v202_v60  ;;  %v220_v17 = vpack.c.bf16 %v89_v12, %v85_v11  ;;  %v93_v23 = vld [vmem:[%s1862_s1 + $0x1c8] sm:$0xff]  ;;  %v219_v27 = vpack.c.bf16 %v88_v19, %v84_v18  ;;  %v92_v30 = vld [vmem:[%s1862_s1 + $0x1c0] sm:$0xff]  ;;  %v74_v34 = vld [vmem:[%s1862_s1 + $0x130] sm:$0xff] }
  0x16   :  { %297 = vmatpush1.bf16.msra.mxu0 %v211_v2  ;;  %v97_v24 = vld [vmem:[%s1862_s1 + $0x1e8] sm:$0xff]  ;;  %v96_v31 = vld [vmem:[%s1862_s1 + $0x1e0] sm:$0xff]  ;;  %v79_v37 = vld [vmem:[%s1862_s1 + $0x158] sm:$0xff]  ;;  %v213_v40 = vpack.c.bf16 %v74_v34, %v70_v32 }
  0x17   :  { %298 = vmatprep.subr.bf16.mxu0 %v216_v4  ;;  %v224_v29 = vpack.c.bf16 %v97_v24, %v93_v23  ;;  %v101_v35 = vld [vmem:[%s1862_s1 + $0x208] sm:$0xff]  ;;  %v83_v38 = vld [vmem:[%s1862_s1 + $0x178] sm:$0xff]  ;;  %v223_v39 = vpack.c.bf16 %v96_v31, %v92_v30  ;;  %v100_v42 = vld [vmem:[%s1862_s1 + $0x200] sm:$0xff] }
  0x18   :  { %373 = vmatpush1.bf16.msra.mxu1 %v201_v3  ;;  %v105_v36 = vld [vmem:[%s1862_s1 + $0x228] sm:$0xff]  ;;  %v104_v43 = vld [vmem:[%s1862_s1 + $0x220] sm:$0xff]  ;;  %v78_v44 = vld [vmem:[%s1862_s1 + $0x150] sm:$0xff]  ;;  %v218_v45 = vpack.c.bf16 %v83_v38, %v79_v37 }
  0x19   :  { %374 = vmatprep.subr.bf16.mxu1 %v206_v9  ;;  %v228_v41 = vpack.c.bf16 %v105_v36, %v101_v35  ;;  %v82_v46 = vld [vmem:[%s1862_s1 + $0x170] sm:$0xff]  ;;  %v109_v47 = vld [vmem:[%s1862_s1 + $0x248] sm:$0xff]  ;;  %v87_v49 = vld [vmem:[%s1862_s1 + $0x198] sm:$0xff]  ;;  %v227_v51 = vpack.c.bf16 %v104_v43, %v100_v42 }
  0x1a   :  { %299 = vmatpush1.bf16.msra.mxu0 %v215_v15  ;;  %v113_v48 = vld [vmem:[%s1862_s1 + $0x268] sm:$0xff]  ;;  %v91_v50 = vld [vmem:[%s1862_s1 + $0x1b8] sm:$0xff]  ;;  %v217_v53 = vpack.c.bf16 %v82_v46, %v78_v44  ;;  %v108_v55 = vld [vmem:[%s1862_s1 + $0x240] sm:$0xff] }
  0x1b   :  { %300 = vmatprep.subr.bf16.mxu0 %v220_v17  ;;  %v232_v54 = vpack.c.bf16 %v113_v48, %v109_v47  ;;  %v112_v56 = vld [vmem:[%s1862_s1 + $0x260] sm:$0xff]  ;;  %v86_v57 = vld [vmem:[%s1862_s1 + $0x190] sm:$0xff]  ;;  %v222_v58 = vpack.c.bf16 %v91_v50, %v87_v49  ;;  %v117_v60 = vld [vmem:[%s1862_s1 + $0x288] sm:$0xff] }
  0x1c   :  { %375 = vmatpush1.bf16.msra.mxu1 %v205_v16  ;;  %v90_v59 = vld [vmem:[%s1862_s1 + $0x1b0] sm:$0xff]  ;;  %v121_v61 = vld [vmem:[%s1862_s1 + $0x2a8] sm:$0xff]  ;;  %v95_v62 = vld [vmem:[%s1862_s1 + $0x1d8] sm:$0xff]  ;;  %v231_v0 = vpack.c.bf16 %v112_v56, %v108_v55 }
  0x1d   :  { %376 = vmatprep.subr.bf16.mxu1 %v210_v21  ;;  %v99_v63 = vld [vmem:[%s1862_s1 + $0x1f8] sm:$0xff]  ;;  %v221_v1 = vpack.c.bf16 %v90_v59, %v86_v57  ;;  %v236_v2 = vpack.c.bf16 %v121_v61, %v117_v60  ;;  %v116_v3 = vld [vmem:[%s1862_s1 + $0x280] sm:$0xff]  ;;  %v94_v5 = vld [vmem:[%s1862_s1 + $0x1d0] sm:$0xff] }
  0x1e   :  { %301 = vmatpush1.bf16.msra.mxu0 %v219_v27  ;;  %v120_v4 = vld [vmem:[%s1862_s1 + $0x2a0] sm:$0xff]  ;;  %v226_v6 = vpack.c.bf16 %v99_v63, %v95_v62  ;;  %v98_v8 = vld [vmem:[%s1862_s1 + $0x1f0] sm:$0xff]  ;;  %v125_v9 = vld [vmem:[%s1862_s1 + $0x2c8] sm:$0xff] }
  0x1f   :  { %302 = vmatprep.subr.bf16.mxu0 %v224_v29  ;;  %v129_v10 = vld [vmem:[%s1862_s1 + $0x2e8] sm:$0xff]  ;;  %v103_v11 = vld [vmem:[%s1862_s1 + $0x218] sm:$0xff]  ;;  %v235_v13 = vpack.c.bf16 %v120_v4, %v116_v3  ;;  %v225_v14 = vpack.c.bf16 %v98_v8, %v94_v5  ;;  %v124_v16 = vld [vmem:[%s1862_s1 + $0x2c0] sm:$0xff] }
  0x20   :  { %377 = vmatpush1.bf16.msra.mxu1 %v209_v28  ;;  %v107_v12 = vld [vmem:[%s1862_s1 + $0x238] sm:$0xff]  ;;  %v240_v15 = vpack.c.bf16 %v129_v10, %v125_v9  ;;  %v128_v17 = vld [vmem:[%s1862_s1 + $0x2e0] sm:$0xff]  ;;  %v102_v18 = vld [vmem:[%s1862_s1 + $0x210] sm:$0xff] }
  0x21   :  { %378 = vmatprep.subr.bf16.mxu1 %v214_v33  ;;  %v230_v19 = vpack.c.bf16 %v107_v12, %v103_v11  ;;  %v106_v20 = vld [vmem:[%s1862_s1 + $0x230] sm:$0xff]  ;;  %v133_v21 = vld [vmem:[%s1862_s1 + $0x308] sm:$0xff]  ;;  %v111_v23 = vld [vmem:[%s1862_s1 + $0x258] sm:$0xff]  ;;  %v239_v26 = vpack.c.bf16 %v128_v17, %v124_v16 }
  0x22   :  { %303 = vmatpush1.bf16.msra.mxu0 %v223_v39  ;;  %v137_v22 = vld [vmem:[%s1862_s1 + $0x328] sm:$0xff]  ;;  %v115_v24 = vld [vmem:[%s1862_s1 + $0x278] sm:$0xff]  ;;  %v229_v28 = vpack.c.bf16 %v106_v20, %v102_v18  ;;  %v132_v30 = vld [vmem:[%s1862_s1 + $0x300] sm:$0xff] }
  0x23   :  { %304 = vmatprep.subr.bf16.mxu0 %v228_v41  ;;  %v34_v25 = vld [vmem:[%s1861_s0 + $0x8] sm:$0x3f]  ;;  %v244_v29 = vpack.c.bf16 %v137_v22, %v133_v21  ;;  %v136_v31 = vld [vmem:[%s1862_s1 + $0x320] sm:$0xff]  ;;  %v110_v32 = vld [vmem:[%s1862_s1 + $0x250] sm:$0xff]  ;;  %v234_v33 = vpack.c.bf16 %v115_v24, %v111_v23 }
  0x24   :  { %379 = vmatpush1.bf16.msra.mxu1 %v213_v40  ;;  %v193_v27 = vpack.c.bf16 %v34_v25, %v34_v25  ;;  %v114_v34 = vld [vmem:[%s1862_s1 + $0x270] sm:$0xff]  ;;  %v141_v35 = vld [vmem:[%s1862_s1 + $0x348] sm:$0xff]  ;;  %v119_v37 = vld [vmem:[%s1862_s1 + $0x298] sm:$0xff]  ;;  %v243_v39 = vpack.c.bf16 %v136_v31, %v132_v30 }
  0x25   :  { %380 = vmatprep.subr.bf16.mxu1 %v218_v45  ;;  %v145_v36 = vld [vmem:[%s1862_s1 + $0x368] sm:$0xff]  ;;  %v123_v38 = vld [vmem:[%s1862_s1 + $0x2b8] sm:$0xff]  ;;  %v140_v40 = vld [vmem:[%s1862_s1 + $0x340] sm:$0xff]  ;;  %v233_v42 = vpack.c.bf16 %v114_v34, %v110_v32 }
  0x26   :  { %305 = vmatpush1.bf16.msra.mxu0 %v227_v51  ;;  %320 = vmatprep.mubr.bf16.mxu0 %v193_v27  ;;  %v144_v41 = vld [vmem:[%s1862_s1 + $0x360] sm:$0xff]  ;;  %v248_v43 = vpack.c.bf16 %v145_v36, %v141_v35  ;;  %v118_v44 = vld [vmem:[%s1862_s1 + $0x290] sm:$0xff]  ;;  %v149_v46 = vld [vmem:[%s1862_s1 + $0x388] sm:$0xff]  ;;  %v238_v47 = vpack.c.bf16 %v123_v38, %v119_v37 }
  0x27   :  { %306 = vmatprep.subr.bf16.mxu0 %v232_v54  ;;  %402 = vmatprep.mubr.bf16.mxu1 %v193_v27  ;;  %v122_v45 = vld [vmem:[%s1862_s1 + $0x2b0] sm:$0xff]  ;;  %v153_v48 = vld [vmem:[%s1862_s1 + $0x3a8] sm:$0xff]  ;;  %v127_v49 = vld [vmem:[%s1862_s1 + $0x2d8] sm:$0xff]  ;;  %v247_v54 = vpack.c.bf16 %v144_v41, %v140_v40 }
  0x28   :  { %381 = vmatpush1.bf16.msra.mxu1 %v217_v53  ;;  %v131_v50 = vld [vmem:[%s1862_s1 + $0x2f8] sm:$0xff]  ;;  %v148_v51 = vld [vmem:[%s1862_s1 + $0x380] sm:$0xff]  ;;  %v126_v55 = vld [vmem:[%s1862_s1 + $0x2d0] sm:$0xff]  ;;  %v237_v59 = vpack.c.bf16 %v122_v45, %v118_v44  ;;  %v252_v60 = vpack.c.bf16 %v153_v48, %v149_v46 }
  0x29   :  { %382 = vmatprep.subr.bf16.mxu1 %v222_v58  ;;  %v152_v53 = vld [vmem:[%s1862_s1 + $0x3a0] sm:$0xff]  ;;  %v130_v56 = vld [vmem:[%s1862_s1 + $0x2f0] sm:$0xff]  ;;  %v157_v57 = vld [vmem:[%s1862_s1 + $0x3c8] sm:$0xff]  ;;  %v242_v62 = vpack.c.bf16 %v131_v50, %v127_v49 }
  0x2a   :  { %307 = vmatpush1.bf16.msra.mxu0 %v231_v0  ;;  %v161_v58 = vld [vmem:[%s1862_s1 + $0x3e8] sm:$0xff]  ;;  %v135_v61 = vld [vmem:[%s1862_s1 + $0x318] sm:$0xff]  ;;  %v156_v0 = vld [vmem:[%s1862_s1 + $0x3c0] sm:$0xff]  ;;  %v241_v8 = vpack.c.bf16 %v130_v56, %v126_v55 }
  0x2b   :  { %308 = vmatprep.subr.bf16.mxu0 %v236_v2  ;;  %v139_v63 = vld [vmem:[%s1862_s1 + $0x338] sm:$0xff]  ;;  %v251_v2 = vpack.c.bf16 %v152_v53, %v148_v51  ;;  %v134_v3 = vld [vmem:[%s1862_s1 + $0x310] sm:$0xff]  ;;  %v256_v9 = vpack.c.bf16 %v161_v58, %v157_v57 }
  0x2c   :  { %383 = vmatpush1.bf16.msra.mxu1 %v221_v1  ;;  %v160_v1 = vld [vmem:[%s1862_s1 + $0x3e0] sm:$0xff]  ;;  %v138_v4 = vld [vmem:[%s1862_s1 + $0x330] sm:$0xff]  ;;  %v167_v5 = vld [vmem:[%s1862_s1 + $0x418] sm:$0xff]  ;;  %v246_v12 = vpack.c.bf16 %v139_v63, %v135_v61 }
  0x2d   :  { %384 = vmatprep.subr.bf16.mxu1 %v226_v6  ;;  %v171_v6 = vld [vmem:[%s1862_s1 + $0x438] sm:$0xff]  ;;  %v255_v16 = vpack.c.bf16 %v160_v1, %v156_v0  ;;  %v142_v17 = vld [vmem:[%s1862_s1 + $0x350] sm:$0xff]  ;;  %v245_v21 = vpack.c.bf16 %v138_v4, %v134_v3 }
  0x2e   :  { %309 = vmatpush1.bf16.msra.mxu0 %v235_v13  ;;  %v143_v10 = vld [vmem:[%s1862_s1 + $0x358] sm:$0xff]  ;;  %v33_v13 = vld [vmem:[%s1861_s0] sm:$0x3f]  ;;  %v146_v18 = vld [vmem:[%s1862_s1 + $0x370] sm:$0xff]  ;;  %v262_v22 = vpack.c.bf16 %v171_v6, %v167_v5 }
  0x2f   :  { %310 = vmatprep.subr.bf16.mxu0 %v240_v15  ;;  %v147_v11 = vld [vmem:[%s1862_s1 + $0x378] sm:$0xff]  ;;  %v170_v15 = vld [vmem:[%s1862_s1 + $0x430] sm:$0xff]  ;;  %v249_v36 = vpack.c.bf16 %v146_v18, %v142_v17 }
  0x30   :  { %385 = vmatpush1.bf16.msra.mxu1 %v225_v14  ;;  %v166_v14 = vld [vmem:[%s1862_s1 + $0x410] sm:$0xff]  ;;  %v179_v20 = vld [vmem:[%s1862_s1 + $0x478] sm:$0xff]  ;;  %v250_v25 = vpack.c.bf16 %v147_v11, %v143_v10 }
  0x31   :  { %386 = vmatprep.subr.bf16.mxu1 %v230_v19  ;;  %v175_v19 = vld [vmem:[%s1862_s1 + $0x458] sm:$0xff]  ;;  %v174_v27 = vld [vmem:[%s1862_s1 + $0x450] sm:$0xff] }
  0x32   :  { %311 = vmatpush1.bf16.msra.mxu0 %v239_v26  ;;  %v151_v23 = vld [vmem:[%s1862_s1 + $0x398] sm:$0xff]  ;;  %v192_v26 = vpack.c.bf16 %v33_v13, %v33_v13  ;;  %v150_v30 = vld [vmem:[%s1862_s1 + $0x390] sm:$0xff]  ;;  %v266_v37 = vpack.c.bf16 %v179_v20, %v175_v19 }
  0x33   :  { %312 = vmatprep.subr.bf16.mxu0 %v244_v29  ;;  %v155_v24 = vld [vmem:[%s1862_s1 + $0x3b8] sm:$0xff]  ;;  %v261_v29 = vpack.c.bf16 %v170_v15, %v166_v14  ;;  %v154_v31 = vld [vmem:[%s1862_s1 + $0x3b0] sm:$0xff] }
  0x34   :  { %387 = vmatpush1.bf16.msra.mxu1 %v229_v28  ;;  %v178_v28 = vld [vmem:[%s1862_s1 + $0x470] sm:$0xff]  ;;  %v183_v32 = vld [vmem:[%s1862_s1 + $0x498] sm:$0xff]  ;;  %v254_v40 = vpack.c.bf16 %v155_v24, %v151_v23  ;;  %v253_v44 = vpack.c.bf16 %v154_v31, %v150_v30 }
  0x35   :  { %388 = vmatprep.subr.bf16.mxu1 %v234_v33  ;;  %v187_v33 = vld [vmem:[%s1862_s1 + $0x4b8] sm:$0xf]  ;;  %v182_v34 = vld [vmem:[%s1862_s1 + $0x490] sm:$0xff]  ;;  %v265_v41 = vpack.c.bf16 %v178_v28, %v174_v27 }
  0x36   :  { %313 = vmatpush1.bf16.msra.mxu0 %v243_v39  ;;  %v186_v35 = vld [vmem:[%s1862_s1 + $0x4b0] sm:$0xf]  ;;  %v159_v38 = vld [vmem:[%s1862_s1 + $0x3d8] sm:$0xff]  ;;  %v270_v45 = vpack.c.bf16 %v187_v33, %v183_v32 }
  0x37   :  { %314 = vmatprep.subr.bf16.mxu0 %v248_v43  ;;  %v163_v39 = vld [vmem:[%s1862_s1 + $0x3f8] sm:$0xff]  ;;  %v162_v43 = vld [vmem:[%s1862_s1 + $0x3f0] sm:$0xff]  ;;  %v269_v46 = vpack.c.bf16 %v186_v35, %v182_v34 }
  0x38   :  { %389 = vmatpush1.bf16.msra.mxu1 %v233_v42  ;;  %v158_v42 = vld [vmem:[%s1862_s1 + $0x3d0] sm:$0xff] }
  0x39   :  { %390 = vmatprep.subr.bf16.mxu1 %v238_v47  ;;  %v258_v47 = vpack.c.bf16 %v163_v39, %v159_v38  ;;  %v257_v48 = vpack.c.bf16 %v162_v43, %v158_v42  ;;  %v283_v49 = vsel %vm275_vm0, %v269_v46, 0 }
  0x3a   :  { %315 = vmatpush1.bf16.msra.mxu0 %v247_v54 }
  0x3b   :  { %316 = vmatprep.subr.bf16.mxu0 %v252_v60 }
  0x3c   :  { %391 = vmatpush1.bf16.msra.mxu1 %v237_v59 }
  0x3d   :  { %392 = vmatprep.subr.bf16.mxu1 %v242_v62 }
  0x3e   :  { %317 = vmatpush1.bf16.msra.mxu0 %v251_v2 }
  0x3f   :  { %318 = vmatprep.subr.bf16.mxu0 %v256_v9 }
  0x40   :  { %393 = vmatpush1.bf16.msra.mxu1 %v241_v8 }
  0x41   :  { %394 = vmatprep.subr.bf16.mxu1 %v246_v12 }
  0x42   :  { %319 = vmatpush1.bf16.msra.mxu0 %v255_v16 }
  0x43   :  { %411 = vmatprep.subr.bf16.mxu0 %v262_v22 }
  0x44   :  { %395 = vmatpush1.bf16.msra.mxu1 %v245_v21 }
  0x45   :  { %396 = vmatprep.subr.bf16.mxu1 %v250_v25  ;;  %321 = vmatmul.mubr.bf16.vlgmr.msra.gmra.mrb[0].mxu0 %v192_v26 }
  0x46   :  { %412 = vmatpush1.bf16.msra.mxu0 %v261_v29  ;;  %443 = vmatprep.mubr.bf16.mxu0 %v1186_v7 }
  0x47   :  { %413 = vmatprep.subr.bf16.mxu0 %v266_v37 }
  0x48   :  { %397 = vmatpush1.bf16.msra.mxu1 %v249_v36 }
  0x49   :  { %398 = vmatprep.subr.bf16.mxu1 %v254_v40 }
  0x4a   :  { %414 = vmatpush1.bf16.msra.mxu0 %v265_v41 }
  0x4b   :  { %1039 = vmatprep.subr.msk.bf16.mxu0 %vm275_vm0, %v270_v45 }
  0x4c   :  { %399 = vmatpush1.bf16.msra.mxu1 %v253_v44 }
  0x4d   :  { %11 = vsyncpa [#allocation4], 0  ;;  %400 = vmatprep.subr.bf16.mxu1 %v258_v47  ;;  %v1187_v7 = vmov 0.0   ;;  %v1122_v50 = vld [vmem:[%s1865_s4 + $0x40] sm:$0xff]   ;;  %v1126_v54 = vld [vmem:[%s1865_s4 + $0x48] sm:$0xff]   ;;  %s1189_s7 = smov [#allocation3]  }
  0x4e   :  { %416 = vmatpush1.bf16.msra.mxu0 %v283_v49  ;;  %29 = vst [vmem:[#allocation2] sm:$0x3f] %v1187_v7  ;;  %30 = vst [vmem:[#allocation2 + $0x8] sm:$0x3f] %v1187_v7  ;;  %v1123_v51 = vld [vmem:[%s1865_s4 + $0xc0] sm:$0xff]   ;;  %v1127_v55 = vld [vmem:[%s1865_s4 + $0xc8] sm:$0xff]  }
  0x4f   :  { %31 = vst [vmem:[#allocation2 + $0x10] sm:$0x3f] %v1187_v7  ;;  %32 = vst [vmem:[#allocation2 + $0x18] sm:$0x3f] %v1187_v7  ;;  %v1124_v53 = vld [vmem:[%s1865_s4] sm:$0xff]   ;;  %1074 = vmatprep.subr.bf16.mxu0 %v1122_v50  ;;  %v1128_v56 = vld [vmem:[%s1865_s4 + $0x8] sm:$0xff]  }
  0x50   :  { %401 = vmatpush1.bf16.msra.mxu1 %v257_v48  ;;  %v1129_v57 = vld [vmem:[%s1865_s4 + $0x88] sm:$0xff]   ;;  %v1130_v58 = vld [vmem:[%s1865_s4 + $0x50] sm:$0xff]   ;;  %v1134_v62 = vld [vmem:[%s1865_s4 + $0x58] sm:$0xff]   ;;  %s1029_s8 = sshll.u32 %s1189_s7, 4  ;;  %s1030_s8 = int_to_ptr.vmem [resolvable:$true] %s1029_s8 }
  0x51   :  { %1040 = vmatmul.mubr.msk.bf16.vlgmr.msra.gmra.mrb[4].mxu0 %vm271_vm1, %v1336_v52  ;;  %v1125_v52 = vld [vmem:[%s1865_s4 + $0x80] sm:$0xff]   ;;  %1096 = vmatprep.subr.bf16.mxu1 %v1123_v51  ;;  %v1131_v59 = vld [vmem:[%s1865_s4 + $0xd0] sm:$0xff]   ;;  %v1135_v63 = vld [vmem:[%s1865_s4 + $0xd8] sm:$0xff]   ;;  %s1162_s9 = scalar_lea.vmem %s1030_s8, 128  ;;  %p1167_p1 = scmp.lt.s32.totalorder %s1030_s8, %s1030_s8 }
  0x52   :  { %1075 = vmatpush3.bf16.msra.mxu0 %v1124_v53  ;;  %v1132_v60 = vld [vmem:[%s1865_s4 + $0x10] sm:$0xff]   ;;  %v1136_v0 = vld [vmem:[%s1865_s4 + $0x18] sm:$0xff]   ;;  %v1138_v2 = vld [vmem:[%s1865_s4 + $0x60] sm:$0xff]   ;;  %p1163_p0 = scmp.ne.s32.totalorder %s1030_s8, %s1162_s9  ;;  %p1168_p2 = scmp.lt.s32.totalorder %s1162_s9, %s1162_s9 }
  0x53   :  { %403 = vmatmul.mubr.bf16.vlgmr.msra.gmra.mrb[4].mxu1 %v192_v26  ;;  %1076 = vmatprep.subr.bf16.mxu0 %v1126_v54  ;;  %v1133_v61 = vld [vmem:[%s1865_s4 + $0x90] sm:$0xff]   ;;  %v1137_v1 = vld [vmem:[%s1865_s4 + $0x98] sm:$0xff]   ;;  %v1139_v3 = vld [vmem:[%s1865_s4 + $0xe0] sm:$0xff]  }
  0x54   :  { %1097 = vmatpush3.bf16.msra.mxu1 %v1125_v52  ;;  %v1140_v4 = vld [vmem:[%s1865_s4 + $0x20] sm:$0xff]   ;;  %v1142_v6 = vld [vmem:[%s1865_s4 + $0x68] sm:$0xff]   ;;  %v1146_v11 = vld [vmem:[%s1865_s4 + $0x70] sm:$0xff]   ;;  %p1169_p3 = por %p1168_p2, %p1167_p1 }
  0x55   :  { %1098 = vmatprep.subr.bf16.mxu1 %v1127_v55  ;;  %v1141_v5 = vld [vmem:[%s1865_s4 + $0xa0] sm:$0xff]   ;;  %v1143_v8 = vld [vmem:[%s1865_s4 + $0xe8] sm:$0xff]   ;;  %v1147_v12 = vld [vmem:[%s1865_s4 + $0xf0] sm:$0xff]  }
  0x56   :  { %1077 = vmatpush3.bf16.msra.mxu0 %v1128_v56  ;;  %v1144_v9 = vld [vmem:[%s1865_s4 + $0x28] sm:$0xff]   ;;  %v1148_v13 = vld [vmem:[%s1865_s4 + $0x30] sm:$0xff]   ;;  %v1150_v15 = vld [vmem:[%s1865_s4 + $0x78] sm:$0xff]   ;;  %p1170_p4 = pnand %p1169_p3, %p1163_p0 }
  0x57   :  { %1078 = vmatprep.subr.bf16.mxu0 %v1130_v58  ;;  %v1145_v10 = vld [vmem:[%s1865_s4 + $0xa8] sm:$0xff]   ;;  %v1149_v14 = vld [vmem:[%s1865_s4 + $0xb0] sm:$0xff]   ;;  %v1151_v16 = vld [vmem:[%s1865_s4 + $0xf8] sm:$0xff]  }
  0x58   :  { %1099 = vmatpush3.bf16.msra.mxu1 %v1129_v57  ;;  %v1152_v17 = vld [vmem:[%s1865_s4 + $0x38] sm:$0xff]   ;;  %v188_v23 = vld [vmem:[#allocation2] sm:$0x3f]  ;;  %v189_v26 = vld [vmem:[#allocation2 + $0x8] sm:$0x3f] }
  0x59   :  { %1100 = vmatprep.subr.bf16.mxu1 %v1131_v59  ;;  %v1153_v18 = vld [vmem:[%s1865_s4 + $0xb8] sm:$0xff]   ;;  %v190_v33 = vld [vmem:[#allocation2 + $0x10] sm:$0x3f] }
  0x5a   :  { %1079 = vmatpush3.bf16.msra.mxu0 %v1132_v60  ;;  %v191_v43 = vld [vmem:[#allocation2 + $0x18] sm:$0x3f] }
  0x5b   :  { %1080 = vmatprep.subr.bf16.mxu0 %v1134_v62 }
  0x5c   :  { %1101 = vmatpush3.bf16.msra.mxu1 %v1133_v61 }
  0x5d   :  { %1102 = vmatprep.subr.bf16.mxu1 %v1135_v63 }
  0x5e   :  { %1081 = vmatpush3.bf16.msra.mxu0 %v1136_v0 }
  0x5f   :  { %1082 = vmatprep.subr.bf16.mxu0 %v1138_v2 }
  0x60   :  { %1103 = vmatpush3.bf16.msra.mxu1 %v1137_v1 }
  0x61   :  { %1104 = vmatprep.subr.bf16.mxu1 %v1139_v3 }
  0x62   :  { %1083 = vmatpush3.bf16.msra.mxu0 %v1140_v4 }
  0x63   :  { %1084 = vmatprep.subr.bf16.mxu0 %v1142_v6 }
  0x64   :  { %1105 = vmatpush3.bf16.msra.mxu1 %v1141_v5 }
  0x65   :  { %1106 = vmatprep.subr.bf16.mxu1 %v1143_v8 }
  0x66   :  { %1085 = vmatpush3.bf16.msra.mxu0 %v1144_v9 }
  0x67   :  { %1086 = vmatprep.subr.bf16.mxu0 %v1146_v11 }
  0x68   :  { %1107 = vmatpush3.bf16.msra.mxu1 %v1145_v10 }
  0x69   :  { %1108 = vmatprep.subr.bf16.mxu1 %v1147_v12 }
  0x6a   :  { %1087 = vmatpush3.bf16.msra.mxu0 %v1148_v13 }
  0x6b   :  { %1088 = vmatprep.subr.bf16.mxu0 %v1150_v15 }
  0x6c   :  { %1109 = vmatpush3.bf16.msra.mxu1 %v1149_v14 }
  0x6d   :  { %1110 = vmatprep.subr.bf16.mxu1 %v1151_v16 }
  0x6e   :  { %1089 = vmatpush3.bf16.msra.mxu0 %v1152_v17 }
  0x70   :  { %1111 = vmatpush3.bf16.msra.mxu1 %v1153_v18 }
  0xe6   :  { %v363_v19 = vpop.f32.mrb[0].mxu1 }
  0xe7   :  { %v365_v20 = vpop.f32.mrb[1].mxu1 }
  0xe8   :  { %v367_v21 = vpop.f32.mrb[2].mxu1 }
  0xe9   :  { %v368_v22 = vpop.f32.mrb[3].mxu1 }
 0x118   :  { %v322_v24 = vpop.f32.mrb[0].mxu0 }
 0x119   :  { %v364_v25 = vadd.f32 %v363_v19, %v322_v24  ;;  %v324_v27 = vpop.f32.mrb[1].mxu0 }
 0x11a   :  { %v366_v28 = vadd.f32 %v365_v20, %v324_v27  ;;  %v326_v29 = vpop.f32.mrb[2].mxu0 }
 0x11b   :  { %v452_v30 = vadd.f32 %v364_v25, %v188_v23  ;;  %v327_v31 = vpop.f32.mrb[3].mxu0 }
 0x11c   :  { %v453_v32 = vadd.f32 %v366_v28, %v189_v26 }
 0x11d   :  { %456 = vst [vmem:[#allocation2] sm:$0x3f] %v452_v30 }
 0x11e   :  { %457 = vst [vmem:[#allocation2 + $0x8] sm:$0x3f] %v453_v32 }
 0x124   :  { %v445_v34 = vpop.f32.mrb[4].mxu0  ;;  %v1798_v35 = vld [vmem:[#allocation2] sm:$0x3f] }
 0x125   :  { %v447_v37 = vpop.f32.mrb[5].mxu0  ;;  %v1800_v38 = vld [vmem:[#allocation2 + $0x8] sm:$0x3f]  ;;  %v467_v39 = vsel %vm275_vm0, %v1798_v35, 0.0  ;;  %v495_v40 = vmul.f32 %v1798_v35, %v1798_v35 }
 0x126   :  { %v404_v36 = vpop.f32.mrb[4].mxu1  ;;  %v449_v44 = vpop.f32.mrb[6].mxu0  ;;  %v468_v45 = vrot.slane %v467_v39, 4  ;;  %v474_v46 = vsel %vm275_vm0, %v1800_v38, 0.0  ;;  %v496_v47 = vmul.f32 %v1800_v38, %v1800_v38 }
 0x127   :  { %v446_v41 = vadd.f32 %v445_v34, %v404_v36  ;;  %v406_v42 = vpop.f32.mrb[5].mxu1  ;;  %v450_v7 = vpop.f32.mrb[7].mxu0  ;;  %v475_v50 = vrot.slane %v474_v46, 4  ;;  %v499_v51 = vsel %vm275_vm0, %v495_v40, 0.0 }
 0x128   :  { %v448_v48 = vadd.f32 %v447_v37, %v406_v42  ;;  %v408_v49 = vpop.f32.mrb[6].mxu1  ;;  %v469_v54 = vadd.f32 %v468_v45, %v467_v39  ;;  %v500_v55 = vrot.slane %v499_v51, 4  ;;  %v506_v56 = vsel %vm275_vm0, %v496_v47, 0.0 }
 0x129   :  { %v454_v53 = vadd.f32 %v446_v41, %v190_v33  ;;  %v409_v52 = vpop.f32.mrb[7].mxu1  ;;  %v476_v58 = vadd.f32 %v475_v50, %v474_v46  ;;  %v507_v59 = vrot.slane %v506_v56, 4 }
 0x12a   :  { %v455_v57 = vadd.f32 %v448_v48, %v191_v43  ;;  %v470_v60 = vrot.slane %v469_v54, 2  ;;  %v501_v61 = vadd.f32 %v500_v55, %v499_v51 }
 0x12b   :  { %458 = vst [vmem:[#allocation2 + $0x10] sm:$0x3f] %v454_v53  ;;  %v477_v62 = vrot.slane %v476_v58, 2  ;;  %v508_v63 = vadd.f32 %v507_v59, %v506_v56 }
 0x12c   :  { %459 = vst [vmem:[#allocation2 + $0x18] sm:$0x3f] %v455_v57  ;;  %v471_v0 = vadd.f32 %v470_v60, %v469_v54  ;;  %v502_v1 = vrot.slane %v501_v61, 2 }
 0x12d   :  { %v478_v2 = vadd.f32 %v477_v62, %v476_v58  ;;  %v509_v3 = vrot.slane %v508_v63, 2 }
 0x12e   :  { %v472_v4 = vrot.slane %v471_v0, 1  ;;  %v503_v5 = vadd.f32 %v502_v1, %v501_v61 }
 0x12f   :  { %v479_v6 = vrot.slane %v478_v2, 1  ;;  %v510_v8 = vadd.f32 %v509_v3, %v508_v63 }
 0x130   :  { %v473_v9 = vadd.f32 %v472_v4, %v471_v0  ;;  %v504_v10 = vrot.slane %v503_v5, 1 }
 0x131   :  { %v480_v12 = vadd.f32 %v479_v6, %v478_v2  ;;  %v511_v13 = vrot.slane %v510_v8, 1 }
 0x132   :  { %v1812_v11 = vld [vmem:[#allocation2 + $0x10] sm:$0x3f]  ;;  %v505_v17 = vadd.f32 %v504_v10, %v503_v5  ;;  %v1820_v18 = vmul.f32 0.16666667, %v473_v9  ;;  %v1188_v9 = vmov 1966171168  }
 0x133   :  { %v1814_v14 = vld [vmem:[#allocation2 + $0x18] sm:$0x3f]  ;;  %v481_v15 = vsel %vm275_vm0, %v1812_v11, 0.0  ;;  %v497_v16 = vmul.f32 %v1812_v11, %v1812_v11  ;;  %v512_v22 = vadd.f32 %v511_v13, %v510_v8  ;;  %v1827_v25 = vmul.f32 0.16666667, %v480_v12 }
 0x134   :  { %v482_v19 = vrot.slane %v481_v15, 4  ;;  %v488_v20 = vsel %vm275_vm0, %v1814_v14, 0.0  ;;  %v498_v21 = vmul.f32 %v1814_v14, %v1814_v14  ;;  %v531_v26 = vmul.f32 0.16666667, %v505_v17 }
 0x135   :  { %v489_v23 = vrot.slane %v488_v20, 4  ;;  %v513_v24 = vsel %vm275_vm0, %v497_v16, 0.0  ;;  %v532_v30 = vmul.f32 0.16666667, %v512_v22  ;;  %v535_v33 = vmul.f32 %v1820_v18, %v1820_v18 }
 0x136   :  { %v483_v27 = vadd.f32 %v482_v19, %v481_v15  ;;  %v514_v28 = vrot.slane %v513_v24, 4  ;;  %v520_v29 = vsel %vm275_vm0, %v498_v21, 0.0  ;;  %v536_v34 = vmul.f32 %v1827_v25, %v1827_v25 }
 0x137   :  { %v490_v31 = vadd.f32 %v489_v23, %v488_v20  ;;  %v521_v32 = vrot.slane %v520_v29, 4  ;;  %v539_v43 = vsub.f32 %v531_v26, %v535_v33  ;;  %v563_v10 = vunpack.c.l.s4 %v1188_v9 }
 0x138   :  { %v484_v36 = vrot.slane %v483_v27, 2  ;;  %v515_v37 = vadd.f32 %v514_v28, %v513_v24  ;;  %v540_v46 = vsub.f32 %v532_v30, %v536_v34  ;;  %v565_v12 = vlaneseq  ;;  %v547_v28 = vld [vmem:[%s1863_s2] sm:$0xf] }
 0x139   :  { %v491_v39 = vrot.slane %v490_v31, 2  ;;  %v522_v40 = vadd.f32 %v521_v32, %v520_v29  ;;  %v543_v53 = vmax.f32 %v539_v43, 0.0  ;;  %v564_v15 = vunpack.c.0.s8 %v563_v10 }
 0x13a   :  { %v485_v41 = vadd.f32 %v484_v36, %v483_v27  ;;  %v516_v42 = vrot.slane %v515_v37, 2  ;;  %v544_v55 = vmax.f32 %v540_v46, 0.0  ;;  %v566_v16 = vshrl.u32 %v565_v12, 7 }
 0x13b   :  { %v492_v44 = vadd.f32 %v491_v39, %v490_v31  ;;  %v523_v45 = vrot.slane %v522_v40, 2  ;;  %v548_v62 = vadd.f32 1e-05, %v543_v53 }
 0x13c   :  { %v486_v47 = vrot.slane %v485_v41, 1  ;;  %v517_v48 = vadd.f32 %v516_v42, %v515_v37  ;;  %v549_v1 = vadd.f32 1e-05, %v544_v55  ;;  %v567_v21 = vsub.s32 %v564_v15, %v566_v16 }
 0x13d   :  { %v493_v49 = vrot.slane %v492_v44, 1  ;;  %v524_v7 = vadd.f32 %v523_v45, %v522_v40  ;;  %1154 = vrsqrt.f32 %v548_v62  ;;  %v590_v29 = vsub.s32 0, %v566_v16 }
 0x13e   :  { %v487_v50 = vadd.f32 %v486_v47, %v485_v41  ;;  %v518_v51 = vrot.slane %v517_v48, 1  ;;  %1156 = vrsqrt.f32 %v549_v1  ;;  %v594_v31 = vsub.s32 1, %v566_v16 }
 0x13f   :  { %v494_v52 = vadd.f32 %v493_v49, %v492_v44  ;;  %v525_v54 = vrot.slane %v524_v7, 1  ;;  %v598_v32 = vsub.s32 2, %v566_v16  ;;  %v602_v33 = vsub.s32 3, %v566_v16 }
 0x140   :  { %v519_v56 = vadd.f32 %v518_v51, %v517_v48  ;;  %v529_v57 = vmul.f32 0.16666667, %v487_v50 }
 0x141   :  { %v526_v58 = vadd.f32 %v525_v54, %v524_v7  ;;  %v530_v59 = vmul.f32 0.16666667, %v494_v52  ;;  %v586_v7 = vld [vmem:[%s1864_s3] sm:$0xf] }
 0x142   :  { %v533_v60 = vmul.f32 0.16666667, %v519_v56  ;;  %v537_v61 = vmul.f32 %v529_v57, %v529_v57 }
 0x143   :  { %v534_v63 = vmul.f32 0.16666667, %v526_v58  ;;  %v538_v0 = vmul.f32 %v530_v59, %v530_v59 }
 0x144   :  { %v541_v2 = vsub.f32 %v533_v60, %v537_v61 }
 0x145   :  { %v542_v3 = vsub.f32 %v534_v63, %v538_v0 }
 0x146   :  { %v545_v4 = vmax.f32 %v541_v2, 0.0 }
 0x147   :  { %v546_v5 = vmax.f32 %v542_v3, 0.0  ;;  %v1155_v13 = vpop.eup %1154 }
 0x148   :  { %v550_v6 = vadd.f32 1e-05, %v545_v4  ;;  %v1157_v17 = vpop.eup %1156  ;;  %v1041_v4 = vld [vmem:[%s1866_s5] ss:$0 sm:$0xff] }
 0x149   :  { %v551_v8 = vadd.f32 1e-05, %v546_v5  ;;  %v560_v20 = vcombine.low %v1155_v13, %v1157_v17 }
 0x14a   :  { %1158 = vrsqrt.f32 %v550_v6 }
 0x14b   :  { %1160 = vrsqrt.f32 %v551_v8  ;;  %v568_v24 = vrot.slane %v560_v20, %v567_v21 }
 0x154   :  { %v1159_v19 = vpop.eup %1158 }
 0x155   :  { %v1161_v22 = vpop.eup %1160 }
 0x156   :  { %v561_v23 = vcombine.low %v1159_v19, %v1161_v22 }
 0x158   :  { %v575_v26 = vrot.slane %v561_v23, %v567_v21 }
 0x15a   :  { %v576_v27 = vcombine.low %v568_v24, %v575_v26 }
 0x15c   :  { %v583_v30 = vrot.slane %v576_v27, %v567_v21 }
 0x15e   :  { %v585_v34 = vmul.f32 %v583_v30, %v547_v28 }
 0x160   :  { %v591_v36 = vrot.slane %v585_v34, %v590_v29  ;;  %v595_v37 = vrot.slane %v585_v34, %v594_v31  ;;  %v599_v39 = vrot.slane %v585_v34, %v598_v32  ;;  %v603_v40 = vrot.slane %v585_v34, %v602_v33 }
 0x162   :  { %v608_v41 = vmul.f32 %v591_v36, %v1820_v18  ;;  %v609_v42 = vmul.f32 %v595_v37, %v1827_v25  ;;  %v610_v43 = vmul.f32 %v599_v39, %v529_v57  ;;  %v611_v44 = vmul.f32 %v603_v40, %v530_v59 }
 0x163   :  { %v643_v53 = vmul.f32 %v595_v37, %v1800_v38  ;;  %v645_v52 = vmul.f32 %v603_v40, %v1814_v14  ;;  %v642_v18 = vmul.f32 %v591_v36, %v1798_v35  ;;  %v644_v25 = vmul.f32 %v599_v39, %v1812_v11 }
 0x164   :  { %v616_v45 = vcombine.low %v608_v41, %v609_v42  ;;  %v617_v46 = vcombine.low %v610_v43, %v611_v44 }
 0x166   :  { %v624_v47 = vrot.slane %v616_v45, %v567_v21  ;;  %v631_v48 = vrot.slane %v617_v46, %v567_v21 }
 0x168   :  { %v632_v49 = vcombine.low %v624_v47, %v631_v48 }
 0x16a   :  { %v639_v50 = vrot.slane %v632_v49, %v567_v21 }
 0x16c   :  { %v641_v51 = vsub.f32 %v586_v7, %v639_v50 }
 0x16e   :  { %v654_v54 = vrot.slane %v641_v51, %v594_v31  ;;  %v662_v55 = vrot.slane %v641_v51, %v602_v33  ;;  %v650_v56 = vrot.slane %v641_v51, %v590_v29  ;;  %v658_v57 = vrot.slane %v641_v51, %v598_v32 }
 0x170   :  { %v668_v58 = vadd.f32 %v654_v54, %v643_v53  ;;  %v670_v59 = vadd.f32 %v662_v55, %v645_v52  ;;  %v667_v60 = vadd.f32 %v650_v56, %v642_v18  ;;  %v669_v61 = vadd.f32 %v658_v57, %v644_v25 }
 0x172   :  { %v672_v62 = vmax.f32 %v668_v58, 0.0  ;;  %v674_v63 = vmax.f32 %v670_v59, 0.0  ;;  %v671_v0 = vmax.f32 %v667_v60, 0.0  ;;  %v673_v1 = vmax.f32 %v669_v61, 0.0 }
 0x174   :  { %v676_v2 = vpack.c.bf16 %v672_v62, %v672_v62  ;;  %v678_v38 = vpack.c.bf16 %v674_v63, %v674_v63  ;;  %v675_v3 = vpack.c.bf16 %v671_v0, %v671_v0  ;;  %v677_v14 = vpack.c.bf16 %v673_v1, %v673_v1 }
 0x176   :  { %974 = vmatprep.mubr.bf16.mxu0 %v676_v2  ;;  %1014 = vmatprep.mubr.bf16.mxu1 %v678_v38 }
 0x177   :  { %975 = vmatmul.mubr.bf16.vlgmr.msra.gmra.mrb[8].mxu0 %v675_v3  ;;  %1015 = vmatmul.mubr.bf16.vlgmr.msra.gmra.mrb[8].mxu1 %v677_v14 }
 0x24a   :  { %v1090_v35 = vpop.f32.mrb[8].mxu0  ;;  %v1112_v11 = vpop.f32.mrb[8].mxu1 }
 0x24b   :  { %v1091_v5 = vpop.f32.mrb[9].mxu0  ;;  %v1113_v6 = vpop.f32.mrb[9].mxu1 }
 0x24c   :  { %v1092_v8 = vadd.f32 %v1091_v5, %v1090_v35  ;;  %v1114_v9 = vadd.f32 %v1113_v6, %v1112_v11  ;;  %v1093_v10 = vpop.f32.mrb[10].mxu0  ;;  %v1115_v12 = vpop.f32.mrb[10].mxu1 }
 0x24d   :  { %v1094_v13 = vpop.f32.mrb[11].mxu0  ;;  %v1116_v15 = vpop.f32.mrb[11].mxu1 }
 0x24e   :  { %v977_v16 = vadd.f32 %v1092_v8, %v1041_v4 }
 0x250   :  { %v1017_v17 = vadd.f32 %v1114_v9, %v977_v16 }
 0x252   :  { %1022 = vst [vmem:[#allocation3] sm:$0x3f] %v1017_v17 }
 0x253   :  { %1173 = shalt.err (!%p1170_p4)
}
 0x254   :  { %s1174_s11 = scalar_lea.hbm %s1867_s6, 128 }
 0x255   :  { %p1175_p5 = scmp.ne.s32.totalorder %s1867_s6, %s1174_s11  ;;  %p1178_p6 = scmp.lt.u32.totalorder %s1174_s11, %s1867_s6 }
 0x257   :  { %p1180_p7 = pnand %p1178_p6, %p1175_p5 }
 0x259   :  { %1183 = shalt.err (!%p1180_p7)
}
 0x25a   :  { %1032 = dma.vmem_to_hbm [thread:$0]  %s1030_s8, 128, %s1867_s6, [#allocation4]  }
 0x25b   :  { %1184 = dma.done.wait [#allocation4], 128  }
 0x25c   :  { %1185 = vsyncadd [#allocation4], 4294967168 }
 0x25d   :  { %1036 = vsyncpa [#allocation4], 1 }

</bundles_post_ra>
